<compile_context>
chip_gen: v5e
topology: v5e:2x2
jax: 0.10.0
libtpu: 0.0.40
codegen_flags: <defaults>
</compile_context>

<pallas_src>
import functools

import jax
import jax.numpy as jnp
from jax import lax
from jax.experimental import pallas as pl
from jax.experimental.pallas import tpu as pltpu

LANE = 128     # vreg lane width: feature dims padded to multiples of this
SUBLANE = 8    # vreg sublane count: batch padded to multiples of this


def _round_up(x, m):
    return ((x + m - 1) // m) * m


def _pad_to(a, shape):
    return jnp.pad(a, [(0, s - d) for d, s in zip(a.shape, shape)])


# ---------------------------------------------------------------------------
# Kernel bodies
# ---------------------------------------------------------------------------
def _mlp(y_f32, w1_ref, w2_ref, w3_ref, b_ref, h_p, cout_p):
    """3x (Linear -> ReLU). bf16 MXU operands, f32 accumulation & epilogue."""
    b = b_ref[...]
    h1 = jnp.dot(y_f32.astype(jnp.bfloat16), w1_ref[...],
                 preferred_element_type=jnp.float32)
    h1 = jnp.maximum(h1 + b[0:1, :h_p], 0.0)
    h2 = jnp.dot(h1.astype(jnp.bfloat16), w2_ref[...],
                 preferred_element_type=jnp.float32)
    h2 = jnp.maximum(h2 + b[1:2, :h_p], 0.0)
    h3 = jnp.dot(h2.astype(jnp.bfloat16), w3_ref[...],
                 preferred_element_type=jnp.float32)
    h3 = jnp.maximum(h3 + b[2:3, :cout_p], 0.0)
    return h3


def _forward_kernel(y_ref, w1_ref, w2_ref, w3_ref, b_ref, o_ref, *,
                    h_p, cout_p):
    o_ref[...] = _mlp(y_ref[...], w1_ref, w2_ref, w3_ref, b_ref,
                      h_p, cout_p).astype(o_ref.dtype)


def _euler_kernel(y_ref, w1_ref, w2_ref, w3_ref, b_ref, o_ref, y_sc, *,
                  num_steps, dt, h_p, cout_p):
    # Solver state lives in VMEM scratch; weights stay resident for all steps.
    y_sc[...] = y_ref[...]

    @pl.loop(0, num_steps)
    def _(step):
        y = y_sc[...]
        f = _mlp(y, w1_ref, w2_ref, w3_ref, b_ref, h_p, cout_p)
        y_sc[...] = y + jnp.float32(dt) * f

    o_ref[...] = y_sc[...].astype(o_ref.dtype)


# ---------------------------------------------------------------------------
# Parameters
# ---------------------------------------------------------------------------
def init_params(key, input_channels, hdim, output_channels):
    """Mirrors the PyTorch init: W ~ N(0, 0.1) generated as (out, in) then
    transposed to (in, out) for y @ W; b ~ N(0, 0.5)."""
    ks = jax.random.split(key, 6)
    w1 = (0.1 * jax.random.normal(ks[0], (hdim, input_channels), jnp.float32)).T
    b1 = 0.5 * jax.random.normal(ks[1], (hdim,), jnp.float32)
    w2 = (0.1 * jax.random.normal(ks[2], (hdim, hdim), jnp.float32)).T
    b2 = 0.5 * jax.random.normal(ks[3], (hdim,), jnp.float32)
    w3 = (0.1 * jax.random.normal(ks[4], (output_channels, hdim), jnp.float32)).T
    b3 = 0.5 * jax.random.normal(ks[5], (output_channels,), jnp.float32)
    return {"w1": w1, "b1": b1, "w2": w2, "b2": b2, "w3": w3, "b3": b3}


def prepare_params(params):
    """One-time kernel packing: pad feature dims to 128 lanes, cast weights
    to bf16, pack the three biases into a single (3, max_dim) f32 array."""
    cin, h = params["w1"].shape
    _, cout = params["w3"].shape
    cin_p, h_p, cout_p = (_round_up(d, LANE) for d in (cin, h, cout))
    bdim = max(h_p, cout_p)
    b = jnp.zeros((3, bdim), jnp.float32)
    b = b.at[0, :h].set(params["b1"])
    b = b.at[1, :h].set(params["b2"])
    b = b.at[2, :cout].set(params["b3"])
    return {
        "w1": _pad_to(params["w1"], (cin_p, h_p)).astype(jnp.bfloat16),
        "w2": _pad_to(params["w2"], (h_p, h_p)).astype(jnp.bfloat16),
        "w3": _pad_to(params["w3"], (h_p, cout_p)).astype(jnp.bfloat16),
        "b": b,
        "cin": cin, "h": h, "cout": cout,
        "cin_p": cin_p, "h_p": h_p, "cout_p": cout_p,
    }


# ---------------------------------------------------------------------------
# pallas_call wrappers
# ---------------------------------------------------------------------------
def _batch_tiling(batch):
    b_pad = _round_up(max(batch, SUBLANE), SUBLANE)
    tile_b = min(b_pad, 128)
    b_pad = _round_up(b_pad, tile_b)
    return b_pad, tile_b


def _weight_specs(kp):
    # Weights & packed biases pinned to block (0, 0): resident in VMEM
    # across all batch-grid iterations (no re-DMA per tile).
    return [
        pl.BlockSpec(kp["w1"].shape, lambda i: (0, 0)),
        pl.BlockSpec(kp["w2"].shape, lambda i: (0, 0)),
        pl.BlockSpec(kp["w3"].shape, lambda i: (0, 0)),
        pl.BlockSpec(kp["b"].shape, lambda i: (0, 0)),
    ]


_COMPILER_PARAMS = pltpu.CompilerParams(
    dimension_semantics=("parallel",),       # batch tiles -> both v7x TCs
    vmem_limit_bytes=32 * 1024 * 1024,       # safe headroom on v5e/v6e/v7x
)


def neural_ode_forward(t, y, kp):
    """Matches NeuralODE.forward(t, y): t is unused, returns net(y)."""
    del t  # unused by the dynamics network, exactly as in the PyTorch module
    batch = y.shape[0]
    b_pad, tile_b = _batch_tiling(batch)
    y_p = _pad_to(y.astype(jnp.float32), (b_pad, kp["cin_p"]))

    kernel = functools.partial(_forward_kernel, h_p=kp["h_p"],
                               cout_p=kp["cout_p"])
    out = pl.pallas_call(
        kernel,
        out_shape=jax.ShapeDtypeStruct((b_pad, kp["cout_p"]), jnp.float32),
        grid=(b_pad // tile_b,),
        in_specs=[pl.BlockSpec((tile_b, kp["cin_p"]), lambda i: (i, 0))]
                + _weight_specs(kp),
        out_specs=pl.BlockSpec((tile_b, kp["cout_p"]), lambda i: (i, 0)),
        compiler_params=_COMPILER_PARAMS,
    )(y_p, kp["w1"], kp["w2"], kp["w3"], kp["b"])
    return out[:batch, :kp["cout"]]


def neural_ode_integrate(y0, kp, num_steps, dt):
    """Fused explicit-Euler integration: all `num_steps` dynamics evaluations
    run inside ONE pallas_call (weights resident in VMEM, state in scratch,
    output aliased onto the input state buffer)."""
    assert kp["cin"] == kp["cout"], "ODE state needs output_ch == input_ch"
    batch = y0.shape[0]
    b_pad, tile_b = _batch_tiling(batch)
    y_p = _pad_to(y0.astype(jnp.float32), (b_pad, kp["cin_p"]))

    kernel = functools.partial(_euler_kernel, num_steps=num_steps, dt=dt,
                               h_p=kp["h_p"], cout_p=kp["cout_p"])
    out = pl.pallas_call(
        kernel,
        out_shape=jax.ShapeDtypeStruct((b_pad, kp["cout_p"]), jnp.float32),
        grid=(b_pad // tile_b,),
        in_specs=[pl.BlockSpec((tile_b, kp["cin_p"]), lambda i: (i, 0))]
                + _weight_specs(kp),
        out_specs=pl.BlockSpec((tile_b, kp["cout_p"]), lambda i: (i, 0)),
        scratch_shapes=[pltpu.VMEM((tile_b, kp["cin_p"]), jnp.float32)],
        input_output_aliases={0: 0},         # state updated in place
        compiler_params=_COMPILER_PARAMS,
    )(y_p, kp["w1"], kp["w2"], kp["w3"], kp["b"])
    return out[:batch, :kp["cout"]]


# ---------------------------------------------------------------------------
# Pure-JAX references
# ---------------------------------------------------------------------------
def _ref_forward_f32(y, p):
    h1 = jnp.maximum(y @ p["w1"] + p["b1"], 0.0)
    h2 = jnp.maximum(h1 @ p["w2"] + p["b2"], 0.0)
    return jnp.maximum(h2 @ p["w3"] + p["b3"], 0.0)


def _ref_forward_bf16(y, p):
    mm = lambda a, w: jnp.dot(a.astype(jnp.bfloat16), w.astype(jnp.bfloat16),
                              preferred_element_type=jnp.float32)
    h1 = jnp.maximum(mm(y, p["w1"]) + p["b1"], 0.0)
    h2 = jnp.maximum(mm(h1, p["w2"]) + p["b2"], 0.0)
    return jnp.maximum(mm(h2, p["w3"]) + p["b3"], 0.0)


def _ref_euler(y0, p, num_steps, dt, f):
    return lax.fori_loop(0, num_steps, lambda _, y: y + dt * f(y, p), y0)


if __name__ == "__main__":
    key = jax.random.PRNGKey(0)
    k_param, k_y = jax.random.split(key)

    batch = 8
    input_channels = 16
    hdim = 32
    output_channels = 16
    num_steps = 8
    dt = 0.05

    params = init_params(k_param, input_channels, hdim, output_channels)
    kparams = prepare_params(params)
    y = jax.random.normal(k_y, (batch, input_channels), jnp.float32)
    t = jnp.float32(0.0)  # passed by the NODE solver, unused

    # Single dynamics evaluation (exact NeuralODE.forward semantics).
    out = jax.block_until_ready(neural_ode_forward(t, y, kparams))
    assert out.shape == (batch, output_channels)
    ref16 = _ref_forward_bf16(y, params)
    ref32 = _ref_forward_f32(y, params)
    assert jnp.allclose(out, ref16, atol=1e-3, rtol=1e-3), "mismatch vs bf16 ref"
    assert jnp.allclose(out, ref32, atol=5e-2, rtol=5e-2), "mismatch vs f32 ref"

    # Fused multi-step Euler integration (solver loop inside one pallas_call).
    y_T = jax.block_until_ready(neural_ode_integrate(y, kparams, num_steps, dt))
    assert y_T.shape == (batch, input_channels)
    ref16_T = _ref_euler(y, params, num_steps, dt, _ref_forward_bf16)
    ref32_T = _ref_euler(y, params, num_steps, dt, _ref_forward_f32)
    assert jnp.allclose(y_T, ref16_T, atol=1e-3, rtol=1e-3), "euler mismatch vs bf16 ref"
    assert jnp.allclose(y_T, ref32_T, atol=5e-2, rtol=5e-2), "euler mismatch vs f32 ref"

    print("KERNEL_OK")
</pallas_src>

<mosaic_0001>
module attributes {stable_mosaic.version = 11 : i64} {
  func.func @_forward_kernel(%arg0: i32, %arg1: memref<8x128xf32, #tpu.memory_space<vmem>>, %arg2: memref<128x128xbf16, #tpu.memory_space<vmem>>, %arg3: memref<128x128xbf16, #tpu.memory_space<vmem>>, %arg4: memref<128x128xbf16, #tpu.memory_space<vmem>>, %arg5: memref<3x128xf32, #tpu.memory_space<vmem>>, %arg6: memref<8x128xf32, #tpu.memory_space<vmem>>) attributes {dimension_semantics = [#tpu.dimension_semantics<parallel>], iteration_bounds = array<i64: 1>, scalar_prefetch = 0 : i64, scratch_operands = 0 : i64, tpu.core_type = #tpu.core_type<tc>, window_params = [{transform_indices = @transform_0, window_bounds = array<i64: 8, 128>}, {pipeline_mode = #tpu.pipeline_mode<synchronous>, transform_indices = @transform_1, window_bounds = array<i64: 128, 128>}, {pipeline_mode = #tpu.pipeline_mode<synchronous>, transform_indices = @transform_2, window_bounds = array<i64: 128, 128>}, {pipeline_mode = #tpu.pipeline_mode<synchronous>, transform_indices = @transform_3, window_bounds = array<i64: 128, 128>}, {pipeline_mode = #tpu.pipeline_mode<synchronous>, transform_indices = @transform_4, window_bounds = array<i64: 3, 128>}, {transform_indices = @transform_5, window_bounds = array<i64: 8, 128>}]} {
    %c0 = arith.constant 0 : index
    %c0_0 = arith.constant 0 : index
    %0 = vector.load %arg1[%c0, %c0_0] : memref<8x128xf32, #tpu.memory_space<vmem>>, vector<8x128xf32>
    %c0_1 = arith.constant 0 : index
    %c0_2 = arith.constant 0 : index
    %1 = vector.load %arg5[%c0_1, %c0_2] : memref<3x128xf32, #tpu.memory_space<vmem>>, vector<3x128xf32>
    %2 = arith.truncf %0 : vector<8x128xf32> to vector<8x128xbf16>
    %c0_3 = arith.constant 0 : index
    %c0_4 = arith.constant 0 : index
    %3 = vector.load %arg2[%c0_3, %c0_4] : memref<128x128xbf16, #tpu.memory_space<vmem>>, vector<128x128xbf16>
    %cst = arith.constant dense<0.000000e+00> : vector<8x128xf32>
    %4 = tpu.matmul %2, %3, %cst {dimension_numbers = #tpu.dot_dimension_numbers<[1], [0], [0], [1], [0, 0, 1, 1], [], []>} : vector<8x128xbf16>, vector<128x128xbf16>, vector<8x128xf32> -> vector<8x128xf32>
    %5 = vector.extract_strided_slice %1 {offsets = [0, 0], sizes = [1, 128], strides = [1, 1]} : vector<3x128xf32> to vector<1x128xf32>
    %6 = vector.broadcast %5 : vector<1x128xf32> to vector<8x128xf32>
    %7 = arith.addf %4, %6 : vector<8x128xf32>
    %cst_5 = arith.constant 0.000000e+00 : f32
    %8 = vector.broadcast %cst_5 : f32 to vector<8x128xf32>
    %9 = arith.maximumf %7, %8 : vector<8x128xf32>
    %10 = arith.truncf %9 : vector<8x128xf32> to vector<8x128xbf16>
    %c0_6 = arith.constant 0 : index
    %c0_7 = arith.constant 0 : index
    %11 = vector.load %arg3[%c0_6, %c0_7] : memref<128x128xbf16, #tpu.memory_space<vmem>>, vector<128x128xbf16>
    %cst_8 = arith.constant dense<0.000000e+00> : vector<8x128xf32>
    %12 = tpu.matmul %10, %11, %cst_8 {dimension_numbers = #tpu.dot_dimension_numbers<[1], [0], [0], [1], [0, 0, 1, 1], [], []>} : vector<8x128xbf16>, vector<128x128xbf16>, vector<8x128xf32> -> vector<8x128xf32>
    %13 = vector.extract_strided_slice %1 {offsets = [1, 0], sizes = [1, 128], strides = [1, 1]} : vector<3x128xf32> to vector<1x128xf32>
    %14 = vector.broadcast %13 : vector<1x128xf32> to vector<8x128xf32>
    %15 = arith.addf %12, %14 : vector<8x128xf32>
    %cst_9 = arith.constant 0.000000e+00 : f32
    %16 = vector.broadcast %cst_9 : f32 to vector<8x128xf32>
    %17 = arith.maximumf %15, %16 : vector<8x128xf32>
    %18 = arith.truncf %17 : vector<8x128xf32> to vector<8x128xbf16>
    %c0_10 = arith.constant 0 : index
    %c0_11 = arith.constant 0 : index
    %19 = vector.load %arg4[%c0_10, %c0_11] : memref<128x128xbf16, #tpu.memory_space<vmem>>, vector<128x128xbf16>
    %cst_12 = arith.constant dense<0.000000e+00> : vector<8x128xf32>
    %20 = tpu.matmul %18, %19, %cst_12 {dimension_numbers = #tpu.dot_dimension_numbers<[1], [0], [0], [1], [0, 0, 1, 1], [], []>} : vector<8x128xbf16>, vector<128x128xbf16>, vector<8x128xf32> -> vector<8x128xf32>
    %21 = vector.extract_strided_slice %1 {offsets = [2, 0], sizes = [1, 128], strides = [1, 1]} : vector<3x128xf32> to vector<1x128xf32>
    %22 = vector.broadcast %21 : vector<1x128xf32> to vector<8x128xf32>
    %23 = arith.addf %20, %22 : vector<8x128xf32>
    %cst_13 = arith.constant 0.000000e+00 : f32
    %24 = vector.broadcast %cst_13 : f32 to vector<8x128xf32>
    %25 = arith.maximumf %23, %24 : vector<8x128xf32>
    %c0_14 = arith.constant 0 : index
    %c0_15 = arith.constant 0 : index
    %26 = vector.load %arg6[%c0_14, %c0_15] : memref<8x128xf32, #tpu.memory_space<vmem>>, vector<8x128xf32>
    tpu.vector_store %arg6[%c0_14, %c0_15], %25 {strides = array<i32>} : memref<8x128xf32, #tpu.memory_space<vmem>>, vector<8x128xf32>,
    return
  }
  func.func @transform_0(%arg0: i32) -> (i32, i32) {
    %c0_i32 = arith.constant 0 : i32
    %c0_i32_0 = arith.constant 0 : i32
    return %arg0, %c0_i32 : i32, i32
  }
  func.func @transform_1(%arg0: i32) -> (i32, i32) {
    %c0_i32 = arith.constant 0 : i32
    %c0_i32_0 = arith.constant 0 : i32
    %c0_i32_1 = arith.constant 0 : i32
    return %c0_i32, %c0_i32_0 : i32, i32
  }
  func.func @transform_2(%arg0: i32) -> (i32, i32) {
    %c0_i32 = arith.constant 0 : i32
    %c0_i32_0 = arith.constant 0 : i32
    %c0_i32_1 = arith.constant 0 : i32
    return %c0_i32, %c0_i32_0 : i32, i32
  }
  func.func @transform_3(%arg0: i32) -> (i32, i32) {
    %c0_i32 = arith.constant 0 : i32
    %c0_i32_0 = arith.constant 0 : i32
    %c0_i32_1 = arith.constant 0 : i32
    return %c0_i32, %c0_i32_0 : i32, i32
  }
  func.func @transform_4(%arg0: i32) -> (i32, i32) {
    %c0_i32 = arith.constant 0 : i32
    %c0_i32_0 = arith.constant 0 : i32
    %c0_i32_1 = arith.constant 0 : i32
    return %c0_i32, %c0_i32_0 : i32, i32
  }
  func.func @transform_5(%arg0: i32) -> (i32, i32) {
    %c0_i32 = arith.constant 0 : i32
    %c0_i32_0 = arith.constant 0 : i32
    return %arg0, %c0_i32 : i32, i32
  }
}

</mosaic_0001>

<bundles_post_ra>
// kernel: tpu_custom_call.1
= control target key start
LH: loop header
LB: loop body
LE: loop exit
PB: predicated region body
PF: predicated region fallthrough
CT: control target
= control target key end

     0   :  { %10 = vsyncpa [#allocation3], 0  ;;  %s693_s0 = inlined_call_operand.hbm [shape: f32[8,128], index: 0, kind: input, shape index: {}]   ;;  %s694_s1 = inlined_call_operand.hbm [shape: bf16[128,128], index: 1, kind: input, shape index: {}]   ;;  %s695_s2 = inlined_call_operand.hbm [shape: bf16[128,128], index: 2, kind: input, shape index: {}]   ;;  %s696_s3 = inlined_call_operand.hbm [shape: bf16[128,128], index: 3, kind: input, shape index: {}]   ;;  %s697_s4 = inlined_call_operand.hbm [shape: f32[3,128], index: 4, kind: input, shape index: {}]   ;;  %s698_s5 = inlined_call_operand.hbm [shape: f32[8,128], index: 5, kind: output, shape index: {}]  }
   0x1   :  { %11 = vsyncpa [#allocation6], 0 }
   0x2   :  { %12 = vsyncpa [#allocation9], 0  ;;  %s29_s20 = sshll.u32 %s694_s1, 4  ;;  %s30_s20 = int_to_ptr.hbm [resolvable:$true] %s29_s20 }
   0x3   :  { %13 = vsyncpa [#allocation4], 0  ;;  %s637_s21 = smov [#allocation5]   ;;  %s55_s25 = sshll.u32 %s696_s3, 4  ;;  %s56_s25 = int_to_ptr.hbm [resolvable:$true] %s55_s25 }
   0x4   :  { %s31_s22 = sshll.u32 %s637_s21, 4  ;;  %s638_s26 = smov 64   ;;  %s32_s22 = int_to_ptr.vmem [resolvable:$true] %s31_s22 }
   0x5   :  { %s639_s27 = smov 4   ;;  %s640_s28 = smov [#allocation8]  }
   0x6   :  { %37 = dma.hbm_to_vmem [thread:$0]  %s30_s20, 1024, %s32_s22, [#allocation6], %s638_s26, %s638_s26, %s639_s27  }
   0x7   :  { %s57_s29 = sshll.u32 %s640_s28, 4  ;;  %s19_s7 = sshll.u32 %s693_s0, 4  ;;  %s58_s29 = int_to_ptr.vmem [resolvable:$true] %s57_s29  ;;  %s20_s7 = int_to_ptr.hbm [resolvable:$true] %s19_s7 }
   0x8   :  { %63 = dma.hbm_to_vmem [thread:$0]  %s56_s25, 1024, %s58_s29, [#allocation9], %s638_s26, %s638_s26, %s639_s27  }
   0x9   :  { %s42_s9 = sshll.u32 %s695_s2, 4  ;;  %s641_s10 = smov [#allocation2]   ;;  %s43_s9 = int_to_ptr.hbm [resolvable:$true] %s42_s9 }
   0xa   :  { %s21_s11 = sshll.u32 %s641_s10, 4  ;;  %s642_s3 = smov [#allocation7]   ;;  %s22_s11 = int_to_ptr.vmem [resolvable:$true] %s21_s11 }
   0xb   :  { %24 = dma.hbm_to_vmem [thread:$0]  %s20_s7, 128, %s22_s11, [#allocation3]  }
   0xc   :  { %s44_s12 = sshll.u32 %s642_s3, 4  ;;  %s69_s15 = sshll.u32 %s697_s4, 4  ;;  %s45_s12 = int_to_ptr.vmem [resolvable:$true] %s44_s12  ;;  %s70_s15 = int_to_ptr.hbm [resolvable:$true] %s69_s15 }
   0xd   :  { %50 = dma.hbm_to_vmem [thread:$0]  %s43_s9, 1024, %s45_s12, [#allocation6], %s638_s26, %s638_s26, %s639_s27  }
   0xe   :  { %s643_s0 = smov [#allocation10]  }
   0xf   :  { %s71_s16 = sshll.u32 %s643_s0, 4  ;;  %s72_s16 = int_to_ptr.vmem [resolvable:$true] %s71_s16 }
  0x10   :  { %74 = dma.hbm_to_vmem [thread:$0]  %s70_s15, 64, %s72_s16, [#allocation9]  }
  0x11   :  { %629 = dma.done.wait [#allocation3], 128  }
  0x12   :  { %630 = vsyncadd [#allocation3], 4294967168 }
  0x13   :  { %631 = dma.done.wait [#allocation6], 2048  }
  0x14   :  { %632 = vsyncadd [#allocation6], 4294965248 }
  0x15   :  { %633 = dma.done.wait [#allocation9], 1088  }
  0x16   :  { %634 = vsyncadd [#allocation9], 4294966208  ;;  %v460_v0 = vld [vmem:[#allocation5 + $0x38] sm:$0xff]  ;;  %v459_v1 = vld [vmem:[#allocation5 + $0x30] sm:$0xff]  ;;  %s644_s2 = smov [#allocation11]   ;;  %s345_s19 = sshll.u32 %s698_s5, 4  ;;  %s346_s19 = int_to_ptr.hbm [resolvable:$true] %s345_s19 }
  0x17   :  { %163 = vmatpush.bf16.msra.mxu0 %v460_v0  ;;  %v468_v2 = vld [vmem:[#allocation7 + $0x38] sm:$0xff]  ;;  %v467_v3 = vld [vmem:[#allocation7 + $0x30] sm:$0xff]  ;;  %v458_v4 = vld [vmem:[#allocation5 + $0x28] sm:$0xff]  ;;  %s343_s4 = sshll.u32 %s644_s2, 4  ;;  %s344_s4 = int_to_ptr.vmem [resolvable:$true] %s343_s4 }
  0x18   :  { %243 = vmatpush.bf16.msra.mxu1 %v468_v2  ;;  %v466_v5 = vld [vmem:[#allocation7 + $0x28] sm:$0xff]  ;;  %v457_v6 = vld [vmem:[#allocation5 + $0x20] sm:$0xff]  ;;  %v456_v8 = vld [vmem:[#allocation5 + $0x18] sm:$0xff] }
  0x19   :  { %v465_v7 = vld [vmem:[#allocation7 + $0x20] sm:$0xff]  ;;  %v464_v9 = vld [vmem:[#allocation7 + $0x18] sm:$0xff]  ;;  %v455_v10 = vld [vmem:[#allocation5 + $0x10] sm:$0xff] }
  0x1a   :  { %v463_v11 = vld [vmem:[#allocation7 + $0x10] sm:$0xff]  ;;  %v454_v12 = vld [vmem:[#allocation5 + $0x8] sm:$0xff]  ;;  %v453_v13 = vld [vmem:[#allocation5] sm:$0xff] }
  0x1b   :  { %164 = vmatpush.bf16.msra.mxu0 %v459_v1  ;;  %v95_v14 = vld [vmem:[#allocation2] sm:$0xff]  ;;  %v462_v16 = vld [vmem:[#allocation7 + $0x8] sm:$0xff]  ;;  %v461_v17 = vld [vmem:[#allocation7] sm:$0xff] }
  0x1c   :  { %244 = vmatpush.bf16.msra.mxu1 %v467_v3  ;;  %v97_v15 = vpack.c.bf16 %v95_v14, %v95_v14  ;;  %v476_v18 = vld [vmem:[#allocation8 + $0x38] sm:$0xff]  ;;  %v475_v19 = vld [vmem:[#allocation8 + $0x30] sm:$0xff]  ;;  %v474_v20 = vld [vmem:[#allocation8 + $0x28] sm:$0xff] }
  0x1d   :  { %323 = vmatpush.bf16.msra.mxu2 %v476_v18  ;;  %v473_v21 = vld [vmem:[#allocation8 + $0x20] sm:$0xff]  ;;  %v472_v22 = vld [vmem:[#allocation8 + $0x18] sm:$0xff]  ;;  %v471_v24 = vld [vmem:[#allocation8 + $0x10] sm:$0xff] }
  0x1e   :  { %v96_v23 = vld [vmem:[#allocation10] sm:$0x7]  ;;  %v470_v31 = vld [vmem:[#allocation8 + $0x8] sm:$0xff] }
  0x1f   :  { %165 = vmatpush.bf16.msra.mxu0 %v458_v4  ;;  %v114_v25 = vperm.slane %v96_v23, 0  ;;  %v469_v32 = vld [vmem:[#allocation8] sm:$0xff]  ;;  %v194_v33 = vperm.slane %v96_v23, 1  ;;  %v274_v39 = vperm.slane %v96_v23, 2 }
  0x20   :  { %245 = vmatpush.bf16.msra.mxu1 %v466_v5 }
  0x21   :  { %324 = vmatpush.bf16.msra.mxu2 %v475_v19 }
  0x23   :  { %166 = vmatpush.bf16.msra.mxu0 %v457_v6 }
  0x24   :  { %246 = vmatpush.bf16.msra.mxu1 %v465_v7 }
  0x25   :  { %325 = vmatpush.bf16.msra.mxu2 %v474_v20 }
  0x27   :  { %167 = vmatpush.bf16.msra.mxu0 %v456_v8 }
  0x28   :  { %247 = vmatpush.bf16.msra.mxu1 %v464_v9 }
  0x29   :  { %326 = vmatpush.bf16.msra.mxu2 %v473_v21 }
  0x2b   :  { %168 = vmatpush.bf16.msra.mxu0 %v455_v10 }
  0x2c   :  { %248 = vmatpush.bf16.msra.mxu1 %v463_v11 }
  0x2d   :  { %327 = vmatpush.bf16.msra.mxu2 %v472_v22 }
  0x2f   :  { %169 = vmatpush.bf16.msra.mxu0 %v454_v12 }
  0x30   :  { %249 = vmatpush.bf16.msra.mxu1 %v462_v16 }
  0x31   :  { %328 = vmatpush.bf16.msra.mxu2 %v471_v24 }
  0x33   :  { %170 = vmatpush.bf16.msra.mxu0 %v453_v13 }
  0x34   :  { %250 = vmatpush.bf16.msra.mxu1 %v461_v17 }
  0x35   :  { %329 = vmatpush.bf16.msra.mxu2 %v470_v31 }
  0x36   :  { %171 = vmatmul.bf16.vlgmr.msra.gmra.mxu0 %v97_v15 }
  0x39   :  { %330 = vmatpush.bf16.msra.mxu2 %v469_v32 }
  0xb3   :  { %v172_v26 = vpop.f32.mrf.mxu0 }
  0xb4   :  { %v173_v27 = vadd.f32 %v172_v26, %v114_v25 }
  0xb6   :  { %v176_v28 = vmax.f32 %v173_v27, 0.0 }
  0xb8   :  { %v177_v29 = vpack.c.bf16 %v176_v28, %v176_v28 }
  0xba   :  { %251 = vmatmul.bf16.vlgmr.msra.gmra.mxu1 %v177_v29 }
  0xbb   :  { %v174_v30 = vpop.f32.mrf.mxu0 }
 0x137   :  { %v252_v34 = vpop.f32.mrf.mxu1 }
 0x138   :  { %v253_v35 = vadd.f32 %v252_v34, %v194_v33 }
 0x13a   :  { %v256_v36 = vmax.f32 %v253_v35, 0.0 }
 0x13c   :  { %v257_v37 = vpack.c.bf16 %v256_v36, %v256_v36 }
 0x13e   :  { %331 = vmatmul.bf16.vlgmr.msra.gmra.mxu2 %v257_v37 }
 0x13f   :  { %v254_v38 = vpop.f32.mrf.mxu1 }
 0x1c1   :  { %v332_v40 = vpop.f32.mrf.mxu2 }
 0x1c2   :  { %v333_v41 = vadd.f32 %v332_v40, %v274_v39 }
 0x1c4   :  { %v336_v42 = vmax.f32 %v333_v41, 0.0 }
 0x1c6   :  { %337 = vst [vmem:[#allocation11] sm:$0xff] %v336_v42 }
 0x1c7   :  { %348 = dma.vmem_to_hbm [thread:$0]  %s344_s4, 128, %s346_s19, [#allocation4]  }
 0x1c9   :  { %v334_v43 = vpop.f32.mrf.mxu2 }
 0x1ca   :  { %635 = dma.done.wait [#allocation4], 128  }
 0x1cb   :  { %636 = vsyncadd [#allocation4], 4294967168 }
 0x1cc   :  { %353 = vsyncpa [#allocation3], 1 }
 0x1cd   :  { %354 = vsyncpa [#allocation6], 1 }
 0x1ce   :  { %355 = vsyncpa [#allocation9], 1 }
 0x1cf   :  { %356 = vsyncpa [#allocation4], 1 }

</bundles_post_ra>
